<compile_context>
chip_gen: v5e
topology: v5e:2x2
jax: 0.10.0
libtpu: 0.0.40
codegen_flags: <defaults>
</compile_context>

<pallas_src>
import jax
import jax.numpy as jnp
from jax.experimental import pallas as pl
from jax.experimental.pallas import tpu as pltpu


def _make_vpu_kernel(cin, cout):
    """Tiny-channel path: VPU contraction, weights/bias as SMEM scalars."""

    def kernel(w_ref, b_ref, x_ref, o_ref):
        # w_ref: SMEM (Cout, Cin) f32, b_ref: SMEM (Cout,) f32
        # x_ref: VMEM (Cin, tp),        o_ref: VMEM (Cout, tp)
        x = x_ref[...].astype(jnp.float32)            # (Cin, tp)
        rows = []
        for co in range(cout):
            acc = x[0:1, :] * w_ref[co, 0]
            for ci in range(1, cin):
                acc = acc + x[ci:ci + 1, :] * w_ref[co, ci]
            rows.append(acc + b_ref[co])
        out = jnp.concatenate(rows, axis=0)           # (Cout, tp) f32
        o_ref[...] = out.astype(o_ref.dtype)

    return kernel


def _mxu_kernel(w_ref, b_ref, x_ref, o_ref):
    """General path: (Cout, Cin) @ (Cin, tp) on the MXU, f32 accumulate."""
    acc = jnp.dot(w_ref[...], x_ref[...], preferred_element_type=jnp.float32)
    o_ref[...] = (acc + b_ref[...]).astype(o_ref.dtype)


def _pick_pixel_tile(cin, cout, hw, itemsize, *, tp_cap=32768,
                     vmem_tile_budget=20 * 1024 * 1024):
    """Pick a lane-aligned pixel tile: as big as the VMEM budget allows
    (double-buffered in+out), capped, and balanced across grid steps."""
    per_pixel = 2 * (cin + cout) * itemsize           # double-buffered in+out
    tp_budget = max(128, (vmem_tile_budget // per_pixel) // 128 * 128)
    tp_max = min(tp_budget, tp_cap)
    if hw <= tp_max:
        return hw            # full spatial extent -> always a legal block shape
    n_tiles = pl.cdiv(hw, tp_max)
    tp = pl.cdiv(hw, n_tiles)                         # balance ragged tail
    tp = ((tp + 127) // 128) * 128                    # lane multiple (<= tp_max)
    return tp


def outconv_1x1(x_nchw, weight, bias):
    """Forward of nn.Conv2d(in_channels, out_channels, kernel_size=1).

    x_nchw: (N, Cin, H, W); weight: (Cout, Cin, 1, 1); bias: (Cout,)
    returns (N, Cout, H, W) with the same dtype as x.
    """
    N, Cin, H, W = x_nchw.shape
    Cout = weight.shape[0]
    HW = H * W
    dtype = x_nchw.dtype
    itemsize = jnp.dtype(dtype).itemsize

    x3 = x_nchw.reshape(N, Cin, HW)                   # free: no data movement
    w = weight.reshape(Cout, Cin)                     # (Cout, Cin)
    b = bias.astype(jnp.float32)                      # (Cout,)

    tp = _pick_pixel_tile(Cin, Cout, HW, itemsize)
    grid = (N, pl.cdiv(HW, tp))

    cost = pl.CostEstimate(
        flops=2 * N * HW * Cin * Cout,
        transcendentals=0,
        bytes_accessed=itemsize * N * HW * (Cin + Cout) + 4 * (Cin * Cout + Cout),
    )
    cparams = pltpu.CompilerParams(
        dimension_semantics=("parallel", "parallel"),
        # raise v5e's 16 MiB scoped default; still safe on v7x's 64 MiB VMEM
        vmem_limit_bytes=32 * 1024 * 1024,
    )

    x_spec = pl.BlockSpec((None, Cin, tp), lambda n, p: (n, 0, p))
    o_spec = pl.BlockSpec((None, Cout, tp), lambda n, p: (n, 0, p))

    if Cin * Cout <= 64:
        # VPU path only for genuinely tiny weights (few madd terms per pixel);
        # anything bigger risks being VALU-bound (no f32 FMA on v6e) while the
        # MXU sits idle.
        kernel = _make_vpu_kernel(Cin, Cout)
        in_specs = [
            pl.BlockSpec(memory_space=pltpu.MemorySpace.SMEM),   # weights
            pl.BlockSpec(memory_space=pltpu.MemorySpace.SMEM),   # bias
            x_spec,
        ]
        w_arg, b_arg = w.astype(jnp.float32), b
    else:
        # MXU path: weights/bias as VMEM tiles, single dot per pixel tile.
        kernel = _mxu_kernel
        in_specs = [
            pl.BlockSpec((Cout, Cin), lambda n, p: (0, 0)),
            pl.BlockSpec((Cout, 1), lambda n, p: (0, 0)),
            x_spec,
        ]
        w_arg, b_arg = w.astype(dtype), b.reshape(Cout, 1)

    out3 = pl.pallas_call(
        kernel,
        out_shape=jax.ShapeDtypeStruct((N, Cout, HW), dtype),
        grid=grid,
        in_specs=in_specs,
        out_specs=o_spec,
        compiler_params=cparams,
        cost_estimate=cost,
    )(w_arg, b_arg, x3)

    return out3.reshape(N, Cout, H, W)                # free: no data movement


def _reference(x_nchw, weight, bias):
    # Pure-JAX reference of nn.Conv2d(kernel_size=1)
    w = weight.reshape(weight.shape[0], weight.shape[1])  # (Cout, Cin)
    return jnp.einsum("nchw,oc->nohw", x_nchw, w) + bias[None, :, None, None]


if __name__ == "__main__":
    key = jax.random.PRNGKey(0)

    # --- primary test: tiny channels (VPU / SMEM-weights path) ---
    N, Cin, H, W = 2, 4, 16, 16
    Cout = 3
    k_x, k_w, k_b = jax.random.split(key, 3)
    x = jax.random.normal(k_x, (N, Cin, H, W), dtype=jnp.float32)
    fan_in = Cin * 1 * 1
    bound = 1.0 / (fan_in ** 0.5)
    weight = jax.random.uniform(k_w, (Cout, Cin, 1, 1), jnp.float32, -bound, bound)
    bias = jax.random.uniform(k_b, (Cout,), jnp.float32, -bound, bound)

    out = jax.jit(outconv_1x1)(x, weight, bias)
    out = jax.block_until_ready(out)
    ref = _reference(x, weight, bias)
    assert out.shape == (N, Cout, H, W)
    assert jnp.allclose(out, ref, atol=1e-5, rtol=1e-5)

    # --- typical UNet OutConv: Cin=64, small Cout (MXU path, tiny output rows) ---
    k_x1, k_w1, k_b1 = jax.random.split(jax.random.PRNGKey(2), 3)
    Cin1, Cout1 = 64, 2
    x1 = jax.random.normal(k_x1, (N, Cin1, H, W), dtype=jnp.float32)
    bound1 = 1.0 / (Cin1 ** 0.5)
    w1 = jax.random.uniform(k_w1, (Cout1, Cin1, 1, 1), jnp.float32, -bound1, bound1)
    b1 = jax.random.uniform(k_b1, (Cout1,), jnp.float32, -bound1, bound1)

    out1 = jax.jit(outconv_1x1)(x1, w1, b1)
    out1 = jax.block_until_ready(out1)
    ref1 = _reference(x1, w1, b1)
    assert out1.shape == (N, Cout1, H, W)
    assert jnp.allclose(out1, ref1, atol=1e-4, rtol=1e-4)

    # --- larger channels (MXU path) ---
    k_x2, k_w2, k_b2 = jax.random.split(jax.random.PRNGKey(1), 3)
    Cin2, Cout2 = 160, 32
    x2 = jax.random.normal(k_x2, (N, Cin2, H, W), dtype=jnp.float32)
    bound2 = 1.0 / (Cin2 ** 0.5)
    w2 = jax.random.uniform(k_w2, (Cout2, Cin2, 1, 1), jnp.float32, -bound2, bound2)
    b2 = jax.random.uniform(k_b2, (Cout2,), jnp.float32, -bound2, bound2)

    out2 = jax.jit(outconv_1x1)(x2, w2, b2)
    out2 = jax.block_until_ready(out2)
    ref2 = _reference(x2, w2, b2)
    assert out2.shape == (N, Cout2, H, W)
    assert jnp.allclose(out2, ref2, atol=1e-4, rtol=1e-4)

    print("KERNEL_OK")
</pallas_src>

<mosaic_0001>
module attributes {stable_mosaic.version = 11 : i64} {
  func.func @kernel(%arg0: i32, %arg1: i32, %arg2: memref<3x4xf32, #tpu.memory_space<smem>>, %arg3: memref<3xf32, #tpu.memory_space<smem>>, %arg4: memref<1x4x256xf32, #tpu.memory_space<vmem>>, %arg5: memref<1x3x256xf32, #tpu.memory_space<vmem>>) attributes {dimension_semantics = [#tpu.dimension_semantics<parallel>, #tpu.dimension_semantics<parallel>], iteration_bounds = array<i64: 2, 1>, scalar_prefetch = 0 : i64, scratch_operands = 0 : i64, tpu.core_type = #tpu.core_type<tc>, window_params = [{transform_indices = @transform_0, window_bounds = array<i64: 3, 4>}, {transform_indices = @transform_1, window_bounds = array<i64: 3>}, {transform_indices = @transform_2, window_bounds = array<i64: 1, 4, 256>}, {transform_indices = @transform_3, window_bounds = array<i64: 1, 3, 256>}]} {
    %c0 = arith.constant 0 : index
    %c0_0 = arith.constant 0 : index
    %c0_1 = arith.constant 0 : index
    %0 = vector.load %arg4[%c0, %c0_0, %c0_1] : memref<1x4x256xf32, #tpu.memory_space<vmem>>, vector<1x4x256xf32>
    %1 = vector.shape_cast %0 : vector<1x4x256xf32> to vector<4x256xf32>
    %2 = vector.extract_strided_slice %1 {offsets = [0, 0], sizes = [1, 256], strides = [1, 1]} : vector<4x256xf32> to vector<1x256xf32>
    %c0_2 = arith.constant 0 : index
    %c0_3 = arith.constant 0 : index
    %3 = memref.load %arg2[%c0_2, %c0_3] : memref<3x4xf32, #tpu.memory_space<smem>>
    %4 = vector.broadcast %3 : f32 to vector<1x256xf32>
    %5 = arith.mulf %2, %4 : vector<1x256xf32>
    %6 = vector.extract_strided_slice %1 {offsets = [1, 0], sizes = [1, 256], strides = [1, 1]} : vector<4x256xf32> to vector<1x256xf32>
    %c0_4 = arith.constant 0 : index
    %c1 = arith.constant 1 : index
    %7 = memref.load %arg2[%c0_4, %c1] : memref<3x4xf32, #tpu.memory_space<smem>>
    %8 = vector.broadcast %7 : f32 to vector<1x256xf32>
    %9 = arith.mulf %6, %8 : vector<1x256xf32>
    %10 = arith.addf %5, %9 : vector<1x256xf32>
    %11 = vector.extract_strided_slice %1 {offsets = [2, 0], sizes = [1, 256], strides = [1, 1]} : vector<4x256xf32> to vector<1x256xf32>
    %c0_5 = arith.constant 0 : index
    %c2 = arith.constant 2 : index
    %12 = memref.load %arg2[%c0_5, %c2] : memref<3x4xf32, #tpu.memory_space<smem>>
    %13 = vector.broadcast %12 : f32 to vector<1x256xf32>
    %14 = arith.mulf %11, %13 : vector<1x256xf32>
    %15 = arith.addf %10, %14 : vector<1x256xf32>
    %16 = vector.extract_strided_slice %1 {offsets = [3, 0], sizes = [1, 256], strides = [1, 1]} : vector<4x256xf32> to vector<1x256xf32>
    %c0_6 = arith.constant 0 : index
    %c3 = arith.constant 3 : index
    %17 = memref.load %arg2[%c0_6, %c3] : memref<3x4xf32, #tpu.memory_space<smem>>
    %18 = vector.broadcast %17 : f32 to vector<1x256xf32>
    %19 = arith.mulf %16, %18 : vector<1x256xf32>
    %20 = arith.addf %15, %19 : vector<1x256xf32>
    %c0_7 = arith.constant 0 : index
    %21 = memref.load %arg3[%c0_7] : memref<3xf32, #tpu.memory_space<smem>>
    %22 = vector.broadcast %21 : f32 to vector<1x256xf32>
    %23 = arith.addf %20, %22 : vector<1x256xf32>
    %24 = vector.extract_strided_slice %1 {offsets = [0, 0], sizes = [1, 256], strides = [1, 1]} : vector<4x256xf32> to vector<1x256xf32>
    %c1_8 = arith.constant 1 : index
    %c0_9 = arith.constant 0 : index
    %25 = memref.load %arg2[%c1_8, %c0_9] : memref<3x4xf32, #tpu.memory_space<smem>>
    %26 = vector.broadcast %25 : f32 to vector<1x256xf32>
    %27 = arith.mulf %24, %26 : vector<1x256xf32>
    %28 = vector.extract_strided_slice %1 {offsets = [1, 0], sizes = [1, 256], strides = [1, 1]} : vector<4x256xf32> to vector<1x256xf32>
    %c1_10 = arith.constant 1 : index
    %c1_11 = arith.constant 1 : index
    %29 = memref.load %arg2[%c1_10, %c1_11] : memref<3x4xf32, #tpu.memory_space<smem>>
    %30 = vector.broadcast %29 : f32 to vector<1x256xf32>
    %31 = arith.mulf %28, %30 : vector<1x256xf32>
    %32 = arith.addf %27, %31 : vector<1x256xf32>
    %33 = vector.extract_strided_slice %1 {offsets = [2, 0], sizes = [1, 256], strides = [1, 1]} : vector<4x256xf32> to vector<1x256xf32>
    %c1_12 = arith.constant 1 : index
    %c2_13 = arith.constant 2 : index
    %34 = memref.load %arg2[%c1_12, %c2_13] : memref<3x4xf32, #tpu.memory_space<smem>>
    %35 = vector.broadcast %34 : f32 to vector<1x256xf32>
    %36 = arith.mulf %33, %35 : vector<1x256xf32>
    %37 = arith.addf %32, %36 : vector<1x256xf32>
    %38 = vector.extract_strided_slice %1 {offsets = [3, 0], sizes = [1, 256], strides = [1, 1]} : vector<4x256xf32> to vector<1x256xf32>
    %c1_14 = arith.constant 1 : index
    %c3_15 = arith.constant 3 : index
    %39 = memref.load %arg2[%c1_14, %c3_15] : memref<3x4xf32, #tpu.memory_space<smem>>
    %40 = vector.broadcast %39 : f32 to vector<1x256xf32>
    %41 = arith.mulf %38, %40 : vector<1x256xf32>
    %42 = arith.addf %37, %41 : vector<1x256xf32>
    %c1_16 = arith.constant 1 : index
    %43 = memref.load %arg3[%c1_16] : memref<3xf32, #tpu.memory_space<smem>>
    %44 = vector.broadcast %43 : f32 to vector<1x256xf32>
    %45 = arith.addf %42, %44 : vector<1x256xf32>
    %46 = vector.extract_strided_slice %1 {offsets = [0, 0], sizes = [1, 256], strides = [1, 1]} : vector<4x256xf32> to vector<1x256xf32>
    %c2_17 = arith.constant 2 : index
    %c0_18 = arith.constant 0 : index
    %47 = memref.load %arg2[%c2_17, %c0_18] : memref<3x4xf32, #tpu.memory_space<smem>>
    %48 = vector.broadcast %47 : f32 to vector<1x256xf32>
    %49 = arith.mulf %46, %48 : vector<1x256xf32>
    %50 = vector.extract_strided_slice %1 {offsets = [1, 0], sizes = [1, 256], strides = [1, 1]} : vector<4x256xf32> to vector<1x256xf32>
    %c2_19 = arith.constant 2 : index
    %c1_20 = arith.constant 1 : index
    %51 = memref.load %arg2[%c2_19, %c1_20] : memref<3x4xf32, #tpu.memory_space<smem>>
    %52 = vector.broadcast %51 : f32 to vector<1x256xf32>
    %53 = arith.mulf %50, %52 : vector<1x256xf32>
    %54 = arith.addf %49, %53 : vector<1x256xf32>
    %55 = vector.extract_strided_slice %1 {offsets = [2, 0], sizes = [1, 256], strides = [1, 1]} : vector<4x256xf32> to vector<1x256xf32>
    %c2_21 = arith.constant 2 : index
    %c2_22 = arith.constant 2 : index
    %56 = memref.load %arg2[%c2_21, %c2_22] : memref<3x4xf32, #tpu.memory_space<smem>>
    %57 = vector.broadcast %56 : f32 to vector<1x256xf32>
    %58 = arith.mulf %55, %57 : vector<1x256xf32>
    %59 = arith.addf %54, %58 : vector<1x256xf32>
    %60 = vector.extract_strided_slice %1 {offsets = [3, 0], sizes = [1, 256], strides = [1, 1]} : vector<4x256xf32> to vector<1x256xf32>
    %c2_23 = arith.constant 2 : index
    %c3_24 = arith.constant 3 : index
    %61 = memref.load %arg2[%c2_23, %c3_24] : memref<3x4xf32, #tpu.memory_space<smem>>
    %62 = vector.broadcast %61 : f32 to vector<1x256xf32>
    %63 = arith.mulf %60, %62 : vector<1x256xf32>
    %64 = arith.addf %59, %63 : vector<1x256xf32>
    %c2_25 = arith.constant 2 : index
    %65 = memref.load %arg3[%c2_25] : memref<3xf32, #tpu.memory_space<smem>>
    %66 = vector.broadcast %65 : f32 to vector<1x256xf32>
    %67 = arith.addf %64, %66 : vector<1x256xf32>
    %68 = tpu.concatenate %23, %45, %67 in 0 : vector<1x256xf32>, vector<1x256xf32>, vector<1x256xf32> -> vector<3x256xf32>
    %c0_26 = arith.constant 0 : index
    %c0_27 = arith.constant 0 : index
    %c0_28 = arith.constant 0 : index
    %69 = vector.load %arg5[%c0_26, %c0_27, %c0_28] : memref<1x3x256xf32, #tpu.memory_space<vmem>>, vector<1x3x256xf32>
    %70 = vector.shape_cast %69 : vector<1x3x256xf32> to vector<3x256xf32>
    %71 = vector.shape_cast %68 : vector<3x256xf32> to vector<1x3x256xf32>
    tpu.vector_store %arg5[%c0_26, %c0_27, %c0_28], %71 {strides = array<i32>} : memref<1x3x256xf32, #tpu.memory_space<vmem>>, vector<1x3x256xf32>,
    return
  }
  func.func @transform_0(%arg0: i32, %arg1: i32) -> (i32, i32) {
    %c0_i32 = arith.constant 0 : i32
    %c0_i32_0 = arith.constant 0 : i32
    %c0_i32_1 = arith.constant 0 : i32
    return %c0_i32, %c0_i32_0 : i32, i32
  }
  func.func @transform_1(%arg0: i32, %arg1: i32) -> i32 {
    %c0_i32 = arith.constant 0 : i32
    %c0_i32_0 = arith.constant 0 : i32
    return %c0_i32 : i32
  }
  func.func @transform_2(%arg0: i32, %arg1: i32) -> (i32, i32, i32) {
    %c0_i32 = arith.constant 0 : i32
    %c0_i32_0 = arith.constant 0 : i32
    return %arg0, %c0_i32, %arg1 : i32, i32, i32
  }
  func.func @transform_3(%arg0: i32, %arg1: i32) -> (i32, i32, i32) {
    %c0_i32 = arith.constant 0 : i32
    %c0_i32_0 = arith.constant 0 : i32
    return %arg0, %c0_i32, %arg1 : i32, i32, i32
  }
}

</mosaic_0001>

<bundles_post_ra>
// kernel: outconv_1x1.1
= control target key start
LH: loop header
LB: loop body
LE: loop exit
PB: predicated region body
PF: predicated region fallthrough
CT: control target
= control target key end

     0   :  { %8 = vsyncpa [#allocation3], 0  ;;  %s704_s0 = inlined_call_operand.vmem [shape: f32[3,4], index: 0, kind: input, shape index: {}]   ;;  %s705_s1 = inlined_call_operand.vmem [shape: f32[3], index: 1, kind: input, shape index: {}]   ;;  %s706_s2 = inlined_call_operand.vmem [shape: f32[2,4,256], index: 2, kind: input, shape index: {}]   ;;  %s707_s3 = inlined_call_operand.vmem [shape: f32[2,3,256], index: 3, kind: output, shape index: {}]  }
   0x1   :  { %9 = vsyncpa [#allocation5], 0  ;;  %s633_s12 = smov 0   ;;  %s635_s13 = smov 0  }
   0x2   :  { %s637_s14 = smov 0  }
   0x3 LB: > { %s465_s15 = sadd.s32 4294967295, %s609_s14   ;;  %s27_s16 = sadd.s32 1, %s605_s13  ;;  %s609_s14 = sphi %s637_s14, %s15_s14   ;;  %s605_s13 = sphi %s635_s13, %s710_s13   ;;  %s601_s12 = sphi %s633_s12, %s709_s12  }
   0x4   : > { %p29_p0 = scmp.ge.s32.totalorder %s27_s16, 2  ;;  %p467_p1 = scmp.ge.s32.totalorder %s609_s14, 1 }
   0x5   : > { %p130_p2 = scmp.lt.s32.totalorder %s609_s14, 3  ;;  %p654_p4 = scmp.eq.s32.totalorder %s465_s15, 0 }
   0x6   : > { %s712_s16 = smov (%p29_p0, %s27_s16), 0  ;;  %s142_s20 = sshll.u32 %s704_s0, 4  ;;  %s143_s20 = int_to_ptr.vmem [resolvable:$true] %s142_s20 }
   0x7   : > { %p131_p3 = pnand %p467_p1, %p130_p2  ;;  %s152_s23 = sshll.u32 %s705_s1, 4  ;;  %s153_s23 = int_to_ptr.vmem [resolvable:$true] %s152_s23 }
   0x8   : > { %s611_s24 = smov [#allocation2]   ;;  %s612_s25 = smov [#allocation4]  }
   0x9   : > { %p512_p5 = pneg %p131_p3 }
   0xa   : > { %178 = sbr.rel (%p131_p3) target bundleno = 57 (0x39), region = 32 }
   0xb   : > { %p513_p6 = pnand %p654_p4, %p512_p5 }
   0xd   : > { %515 = dma.vmem_to_smem (!%p513_p6), %s143_s20, 64, %s611_s24, [#allocation3]  }
   0xe   : > { %518 = dma.vmem_to_smem (!%p513_p6), %s153_s23, 16, %s612_s25, [#allocation5]  }
   0xf   : > { %592 = dma.done.wait (%p654_p4), [#allocation3], 64  }
  0x10   : > { %594 = vsyncadd (%p654_p4), [#allocation3], 4294967232 }
  0x11   : > { %596 = dma.done.wait (%p654_p4), [#allocation5], 16  }
  0x12   : > { %598 = vsyncadd (%p654_p4), [#allocation5], 4294967280 }
  0x13   : > { %190 = sfence }
  0x14   : > { %p218_p7 = scmp.lt.s32.totalorder %s601_s12, 1  ;;  %s238_s26 = sld [smem:[#allocation2]]  ;;  %vm343_vm0 = vcmask 1040384   ;;  %vm346_vm1 = vcmask 1041408   ;;  %vm352_vm2 = vcmask 1043456  }
  0x15   : > { %s478_s27 = sld [smem:[#allocation2 + $0x1]] }
  0x16   : > { %s714_s12 = smov (!%p218_p7, %s601_s12), 1  ;;  %s480_s28 = sld [smem:[#allocation2 + $0x2]] }
  0x17   : > { %s502_s29 = sshll.u32 %s714_s12, 3  ;;  %s482_s30 = sld [smem:[#allocation2 + $0x3]] }
  0x18   : > { %s225_s6 = scalar_lea.vmem %s706_s2, %s502_s29  ;;  %s684_s7 = sld [smem:[#allocation4]] }
  0x19   : > { %v237_v0 = vld [vmem:[%s225_s6] sm:$0xff]  ;;  %s484_s8 = sld [smem:[#allocation2 + $0x80]]  ;;  %s235_s24 = scalar_lea.vmem %s707_s3, %s502_s29 }
  0x1a   : > { %v239_v1 = vstv %s238_s26  ;;  %s485_s9 = sld [smem:[#allocation2 + $0x81]] }
  0x1b   : > { %v242_v2 = vstv %s478_s27  ;;  %v240_v3 = vmul.f32 %v239_v1, %v237_v0  ;;  %s487_s10 = sld [smem:[#allocation2 + $0x82]] }
  0x1c   : > { %v243_v4 = vmul.f32 %v242_v2, %v237_v0  ;;  %v250_v5 = vstv %s480_s28  ;;  %s489_s11 = sld [smem:[#allocation2 + $0x83]] }
  0x1d   : > { %v251_v7 = vmul.f32 %v250_v5, %v237_v0  ;;  %v258_v8 = vstv %s482_s30  ;;  %s686_s15 = sld [smem:[#allocation4 + $0x1]] }
  0x1e   : > { %v479_v6 = vrot.slane %v243_v4, 9  ;;  %v259_v9 = vmul.f32 %v258_v8, %v237_v0  ;;  %s492_s17 = sld [smem:[#allocation2 + $0x100]]  ;;  %v266_v29 = vstv %s684_s7 }
  0x1f   : > { %v481_v11 = vrot.slane %v251_v7, 10  ;;  %v269_v12 = vstv %s484_s8  ;;  %s493_s18 = sld [smem:[#allocation2 + $0x101]] }
  0x20   : > { %v248_v10 = vadd.f32 %v479_v6, %v240_v3  ;;  %v483_v13 = vrot.slane %v259_v9, 11  ;;  %v272_v14 = vstv %s485_s9  ;;  %s495_s19 = sld [smem:[#allocation2 + $0x102]]  ;;  %v270_v16 = vmul.f32 %v269_v12, %v237_v0 }
  0x21   : > { %v273_v17 = vmul.f32 %v272_v14, %v237_v0  ;;  %v280_v18 = vstv %s487_s10  ;;  %s497_s20 = sld [smem:[#allocation2 + $0x103]] }
  0x22   : > { %v256_v15 = vadd.f32 %v481_v11, %v248_v10  ;;  %v281_v19 = vmul.f32 %v280_v18, %v237_v0  ;;  %v288_v20 = vstv %s489_s11  ;;  %s499_s21 = sld [smem:[#allocation4 + $0x2]] }
  0x23   : > { %v486_v21 = vrot.slane %v273_v17, 9  ;;  %v289_v22 = vmul.f32 %v288_v20, %v237_v0  ;;  %v296_v36 = vstv %s686_s15 }
  0x24   : > { %v488_v23 = vrot.slane %v281_v19, 10  ;;  %v299_v24 = vstv %s492_s17  ;;  %v264_v25 = vadd.f32 %v483_v13, %v256_v15 }
  0x25   : > { %v278_v26 = vadd.f32 %v486_v21, %v270_v16  ;;  %v490_v27 = vrot.slane %v289_v22, 11  ;;  %v302_v28 = vstv %s493_s18  ;;  %v300_v30 = vmul.f32 %v299_v24, %v237_v0 }
  0x26   : > { %v303_v31 = vmul.f32 %v302_v28, %v237_v0  ;;  %v310_v32 = vstv %s495_s19  ;;  %v267_v39 = vadd.f32 %v266_v29, %v264_v25 }
  0x27   : > { %v286_v33 = vadd.f32 %v488_v23, %v278_v26  ;;  %v311_v34 = vmul.f32 %v310_v32, %v237_v0  ;;  %v318_v35 = vstv %s497_s20 }
  0x28   : > { %v494_v37 = vrot.slane %v303_v31, 9  ;;  %v319_v38 = vmul.f32 %v318_v35, %v237_v0  ;;  %v329_v46 = vperm.slane %v267_v39, 0  ;;  %v326_v47 = vstv %s499_s21 }
  0x29   : > { %v294_v40 = vadd.f32 %v490_v27, %v286_v33  ;;  %v496_v41 = vrot.slane %v311_v34, 10  ;;  %v330_v48 = vperm.slane %v267_v39, 4 }
  0x2a   : > { %v308_v42 = vadd.f32 %v494_v37, %v300_v30  ;;  %v498_v43 = vrot.slane %v319_v38, 11 }
  0x2b   : > { %v297_v44 = vadd.f32 %v296_v36, %v294_v40 }
  0x2c   : > { %v316_v45 = vadd.f32 %v496_v41, %v308_v42 }
  0x2d   : > { %v334_v49 = vperm.slane %v297_v44, 0  ;;  %v335_v50 = vperm.slane %v297_v44, 4 }
  0x2e   : > { %v324_v51 = vadd.f32 %v498_v43, %v316_v45 }
  0x2f   : > { %v344_v53 = vsel %vm343_vm0, %v329_v46, %v334_v49  ;;  %v345_v54 = vsel %vm343_vm0, %v330_v48, %v335_v50 }
  0x30   : > { %v327_v52 = vadd.f32 %v326_v47, %v324_v51 }
  0x32   : > { %v339_v55 = vperm.slane %v327_v52, 0  ;;  %v340_v56 = vperm.slane %v327_v52, 4 }
  0x34   : > { %v347_v57 = vsel %vm346_vm1, %v344_v53, %v339_v55  ;;  %v348_v58 = vsel %vm346_vm1, %v345_v54, %v340_v56 }
  0x35   : > { %v351_v59 = vrot.slane %v348_v58, 4 }
  0x37   : > { %v353_v60 = vsel %vm352_vm2, %v347_v57, %v351_v59 }
  0x38   : > { %355 = vst [vmem:[%s235_s24] sm:$0x77] %v353_v60 }
  0x39 PF: > { %s15_s14 = sadd.s32 1, %s609_s14   ;;  %s709_s12 = smov %s605_s13 }
  0x3a   : > { %p12_p8 = scmp.ge.s32.totalorder %s15_s14, 4   ;;  %s710_s13 = smov %s712_s16 }
  0x3c   :  { %14 = sbr.rel (!%p12_p8) target bundleno = 3 (0x3), region = 71 }
  0x41   :  { %386 = vsyncpa [#allocation3], 1 }
  0x42   :  { %388 = vsyncpa [#allocation3 + $0x1], 1 }
  0x43   :  { %389 = vsyncpa [#allocation5], 1 }

</bundles_post_ra>
